<compile_context>
chip_gen: v7x
topology: tpu7x:2x2x1
jax: 0.10.0
libtpu: 0.0.40
codegen_flags: <defaults>
</compile_context>

<pallas_src>
import jax
import jax.numpy as jnp
from jax.experimental import pallas as pl
from jax.experimental.pallas import tpu as pltpu

_LANE = 128
_SUBLANE = 8


def _round_up(n, m):
    return ((n + m - 1) // m) * m


def _vmem_capacity_bytes():
    try:
        return int(pltpu.get_tpu_info().vmem_capacity_bytes)
    except Exception:
        return 64 * 1024 * 1024  # conservative default (v7x per-core VMEM)


def _choose_tb(cin_p, cout_p, in_itemsize, out_itemsize, budget_bytes):
    """Largest B-tile whose double-buffered working set fits the budget."""
    fixed = 2 * cin_p * cout_p * in_itemsize + 2 * cout_p * 4   # W (x2 bufs) + bias
    per_row = 2 * (cin_p * in_itemsize + cout_p * out_itemsize)  # x + out, x2 bufs
    avail = max(budget_bytes - fixed, per_row * _SUBLANE)
    tb = avail // per_row
    tb = min(tb, 4096)
    if tb >= 256:
        tb = (tb // 256) * 256      # 256-aligned M tiles feed the 2x256x256 MXU
    else:
        tb = max(_SUBLANE, (tb // _SUBLANE) * _SUBLANE)
    return int(tb)


def _per_metapath_kernel(x_ref, w_ref, b_ref, o_ref):
    # x_ref: (TB, cin), w_ref: (cin, cout), b_ref: (1, cout) f32, o_ref: (TB, cout)
    acc = jnp.dot(x_ref[...], w_ref[...], preferred_element_type=jnp.float32)
    o_ref[...] = (acc + b_ref[...]).astype(o_ref.dtype)


def linear_per_metapath_metapath_major(x_cm, W, bias, *, tb=None, mxu_dtype=None):
    """Metapath-major entry point (no transposes).

    x_cm: [C, B, cin], W: [C, cin, cout], bias: [C, cout] -> [C, B, cout].
    """
    C, B, cin = x_cm.shape
    cout = W.shape[-1]
    assert W.shape == (C, cin, cout)
    assert bias.shape == (C, cout)

    out_dtype = x_cm.dtype
    if mxu_dtype is not None:
        x_cm = x_cm.astype(mxu_dtype)
        W = W.astype(mxu_dtype)

    # Lane-dense padding: last dims become multiples of 128 -> unmasked vld/vst.
    cin_p = _round_up(cin, _LANE)
    cout_p = _round_up(cout, _LANE)
    if cin_p != cin:
        x_cm = jnp.pad(x_cm, ((0, 0), (0, 0), (0, cin_p - cin)))
        W = jnp.pad(W, ((0, 0), (0, cin_p - cin), (0, 0)))
    if cout_p != cout:
        W = jnp.pad(W, ((0, 0), (0, 0), (0, cout_p - cout)))
        bias = jnp.pad(bias, ((0, 0), (0, cout_p - cout)))

    bias3 = bias.reshape(C, 1, cout_p).astype(jnp.float32)

    in_itemsize = jnp.dtype(x_cm.dtype).itemsize
    out_itemsize = jnp.dtype(out_dtype).itemsize

    vmem_cap = _vmem_capacity_bytes()
    if tb is None:
        budget = max(16 << 20, vmem_cap // 2 - (8 << 20))
        tb = _choose_tb(cin_p, cout_p, in_itemsize, out_itemsize, budget)
    tb = min(int(tb), _round_up(B, _SUBLANE))
    tb = max(_SUBLANE, (tb // _SUBLANE) * _SUBLANE)

    B_p = _round_up(B, tb)
    if B_p != B:
        x_cm = jnp.pad(x_cm, ((0, 0), (0, B_p - B), (0, 0)))
    n_b = B_p // tb

    # Double-buffered x/out tiles + resident W (x2 buffers) + bias, plus slack.
    vmem_need = (2 * tb * cin_p * in_itemsize
                 + 2 * tb * cout_p * out_itemsize
                 + 2 * cin_p * cout_p * in_itemsize
                 + 2 * cout_p * 4)
    vmem_limit = int(min(vmem_cap - (8 << 20),
                         max(32 << 20, vmem_need + (8 << 20))))

    cost = pl.CostEstimate(
        flops=2 * C * B_p * cin_p * cout_p,
        transcendentals=0,
        bytes_accessed=(x_cm.size * in_itemsize
                        + W.size * in_itemsize
                        + bias3.size * 4
                        + C * B_p * cout_p * out_itemsize),
    )

    out_cm = pl.pallas_call(
        _per_metapath_kernel,
        out_shape=jax.ShapeDtypeStruct((C, B_p, cout_p), out_dtype),
        grid_spec=pltpu.PrefetchScalarGridSpec(
            num_scalar_prefetch=0,
            grid=(C, n_b),  # B-tile axis innermost -> W/bias DMA once per metapath
            in_specs=[
                pl.BlockSpec((pl.Squeezed(), tb, cin_p),
                             lambda c, b: (c, b, 0)),
                pl.BlockSpec((pl.Squeezed(), cin_p, cout_p),
                             lambda c, b: (c, 0, 0)),
                pl.BlockSpec((pl.Squeezed(), 1, cout_p),
                             lambda c, b: (c, 0, 0)),
            ],
            out_specs=pl.BlockSpec((pl.Squeezed(), tb, cout_p),
                                   lambda c, b: (c, b, 0)),
        ),
        compiler_params=pltpu.CompilerParams(
            dimension_semantics=("parallel", "parallel"),
            vmem_limit_bytes=vmem_limit,
        ),
        cost_estimate=cost,
    )(x_cm, W, bias3)

    if B_p != B or cout_p != cout:
        out_cm = out_cm[:, :B, :cout]
    return out_cm


def linear_per_metapath(x, W, bias, *, tb=None, mxu_dtype=None):
    """PyTorch-layout entry point: x [B, C, cin] -> [B, C, cout].

    NOTE: pipelines should prefer `linear_per_metapath_metapath_major` and
    keep the [C, B, *] layout end-to-end; these two transposes are full
    HBM round trips kept only to match the nn.Module's layout exactly.
    """
    x_cm = jnp.transpose(x, (1, 0, 2))
    out_cm = linear_per_metapath_metapath_major(x_cm, W, bias,
                                                tb=tb, mxu_dtype=mxu_dtype)
    return jnp.transpose(out_cm, (1, 0, 2))


def init_params(key, num_metapaths, cin, cout, dtype=jnp.float32):
    """xavier_uniform(gain=sqrt(2)) matching PyTorch 3-D fan semantics; zero bias."""
    gain = jnp.sqrt(2.0)  # calculate_gain('relu')
    fan_in = cin * cout
    fan_out = num_metapaths * cout
    bound = gain * jnp.sqrt(6.0 / (fan_in + fan_out))
    W = jax.random.uniform(
        key, (num_metapaths, cin, cout), dtype=dtype, minval=-bound, maxval=bound
    )
    bias = jnp.zeros((num_metapaths, cout), dtype=dtype)
    return W, bias


if __name__ == "__main__":
    B, C, CIN, COUT = 8, 4, 32, 32  # batch(nodes), num_metapaths, cin, cout

    key = jax.random.PRNGKey(0)
    kx, kw, kb, kx2 = jax.random.split(key, 4)

    x = jax.random.normal(kx, (B, C, CIN), dtype=jnp.float32)
    W, bias = init_params(kw, C, CIN, COUT)
    # use a non-zero bias so the bias-add path is actually validated
    bias = 0.1 * jax.random.normal(kb, (C, COUT), dtype=jnp.float32)

    y = jax.block_until_ready(linear_per_metapath(x, W, bias))
    y_ref = jnp.einsum("bcm,cmn->bcn", x, W) + bias[None]
    assert y.shape == (B, C, COUT)
    assert jnp.allclose(y, y_ref, atol=1e-5, rtol=1e-5)

    # Exercise the B-tiling + padding path (B not a multiple of the tile).
    B2 = 13
    x2 = jax.random.normal(kx2, (B2, C, CIN), dtype=jnp.float32)
    y2 = jax.block_until_ready(linear_per_metapath(x2, W, bias, tb=8))
    y2_ref = jnp.einsum("bcm,cmn->bcn", x2, W) + bias[None]
    assert y2.shape == (B2, C, COUT)
    assert jnp.allclose(y2, y2_ref, atol=1e-5, rtol=1e-5)

    print("KERNEL_OK")
</pallas_src>

<mosaic_0001>
module attributes {stable_mosaic.version = 11 : i64} {
  func.func @_per_metapath_kernel(%arg0: i32, %arg1: i32, %arg2: memref<1x8x128xf32, #tpu.memory_space<vmem>>, %arg3: memref<1x128x128xf32, #tpu.memory_space<vmem>>, %arg4: memref<1x1x128xf32, #tpu.memory_space<vmem>>, %arg5: memref<1x8x128xf32, #tpu.memory_space<vmem>>) attributes {dimension_semantics = [#tpu.dimension_semantics<parallel>, #tpu.dimension_semantics<parallel>], iteration_bounds = array<i64: 4, 1>, scalar_prefetch = 0 : i64, scratch_operands = 0 : i64, tpu.core_type = #tpu.core_type<tc>, window_params = [{transform_indices = @transform_0, window_bounds = array<i64: 1, 8, 128>}, {transform_indices = @transform_1, window_bounds = array<i64: 1, 128, 128>}, {transform_indices = @transform_2, window_bounds = array<i64: 1, 1, 128>}, {transform_indices = @transform_3, window_bounds = array<i64: 1, 8, 128>}]} {
    %c0 = arith.constant 0 : index
    %c0_0 = arith.constant 0 : index
    %c0_1 = arith.constant 0 : index
    %0 = vector.load %arg2[%c0, %c0_0, %c0_1] : memref<1x8x128xf32, #tpu.memory_space<vmem>>, vector<1x8x128xf32>
    %1 = vector.shape_cast %0 : vector<1x8x128xf32> to vector<8x128xf32>
    %c0_2 = arith.constant 0 : index
    %c0_3 = arith.constant 0 : index
    %c0_4 = arith.constant 0 : index
    %2 = vector.load %arg3[%c0_2, %c0_3, %c0_4] : memref<1x128x128xf32, #tpu.memory_space<vmem>>, vector<1x128x128xf32>
    %3 = vector.shape_cast %2 : vector<1x128x128xf32> to vector<128x128xf32>
    %cst = arith.constant dense<0.000000e+00> : vector<8x128xf32>
    %4 = tpu.matmul %1, %3, %cst {dimension_numbers = #tpu.dot_dimension_numbers<[1], [0], [0], [1], [0, 0, 1, 1], [], []>} : vector<8x128xf32>, vector<128x128xf32>, vector<8x128xf32> -> vector<8x128xf32>
    %c0_5 = arith.constant 0 : index
    %c0_6 = arith.constant 0 : index
    %c0_7 = arith.constant 0 : index
    %5 = vector.load %arg4[%c0_5, %c0_6, %c0_7] : memref<1x1x128xf32, #tpu.memory_space<vmem>>, vector<1x1x128xf32>
    %6 = vector.shape_cast %5 : vector<1x1x128xf32> to vector<1x128xf32>
    %7 = vector.broadcast %6 : vector<1x128xf32> to vector<8x128xf32>
    %8 = arith.addf %4, %7 : vector<8x128xf32>
    %c0_8 = arith.constant 0 : index
    %c0_9 = arith.constant 0 : index
    %c0_10 = arith.constant 0 : index
    %9 = vector.load %arg5[%c0_8, %c0_9, %c0_10] : memref<1x8x128xf32, #tpu.memory_space<vmem>>, vector<1x8x128xf32>
    %10 = vector.shape_cast %9 : vector<1x8x128xf32> to vector<8x128xf32>
    %11 = vector.shape_cast %8 : vector<8x128xf32> to vector<1x8x128xf32>
    tpu.vector_store %arg5[%c0_8, %c0_9, %c0_10], %11 {strides = array<i32>} : memref<1x8x128xf32, #tpu.memory_space<vmem>>, vector<1x8x128xf32>,
    return
  }
  func.func @transform_0(%arg0: i32, %arg1: i32) -> (i32, i32, i32) {
    %c0_i32 = arith.constant 0 : i32
    %c0_i32_0 = arith.constant 0 : i32
    return %arg0, %arg1, %c0_i32 : i32, i32, i32
  }
  func.func @transform_1(%arg0: i32, %arg1: i32) -> (i32, i32, i32) {
    %c0_i32 = arith.constant 0 : i32
    %c0_i32_0 = arith.constant 0 : i32
    %c0_i32_1 = arith.constant 0 : i32
    return %arg0, %c0_i32, %c0_i32_0 : i32, i32, i32
  }
  func.func @transform_2(%arg0: i32, %arg1: i32) -> (i32, i32, i32) {
    %c0_i32 = arith.constant 0 : i32
    %c0_i32_0 = arith.constant 0 : i32
    %c0_i32_1 = arith.constant 0 : i32
    return %arg0, %c0_i32, %c0_i32_0 : i32, i32, i32
  }
  func.func @transform_3(%arg0: i32, %arg1: i32) -> (i32, i32, i32) {
    %c0_i32 = arith.constant 0 : i32
    %c0_i32_0 = arith.constant 0 : i32
    return %arg0, %arg1, %c0_i32 : i32, i32, i32
  }
}

</mosaic_0001>

<bundles_post_ra>
// kernel: tpu_custom_call.1
= control target key start
LH: loop header
LB: loop body
LE: loop exit
PB: predicated region body
PF: predicated region fallthrough
CT: control target
= control target key end

     0   :  { %8 = vsyncpa [#allocation3], 0  ;;  %s1073_s0 = inlined_call_operand.hbm [shape: f32[4,8,128], index: 0, kind: input, shape index: {}]   ;;  %s1074_s1 = inlined_call_operand.hbm [shape: f32[4,128,128], index: 1, kind: input, shape index: {}]   ;;  %s1075_s2 = inlined_call_operand.vmem [shape: f32[4,1,128], index: 2, kind: input, shape index: {}]   ;;  %s1076_s3 = inlined_call_operand.hbm [shape: f32[4,8,128], index: 3, kind: output, shape index: {}]  }
   0x1   :  { %10 = vsyncpa [#allocation3 + $0x1], 0 }
   0x2   :  { %11 = vsyncpa [#allocation6], 0 }
   0x3   :  { %13 = vsyncpa [#allocation6 + $0x1], 0 }
   0x4   :  { %14 = vsyncpa [#allocation4], 0 }
   0x5   :  { %16 = vsyncpa [#allocation4 + $0x1], 0  ;;  %s822_s12 = smov 0   ;;  %s824_s13 = smov 0  }
   0x6   :  { %s826_s14 = smov 0   ;;  %s828_s15 = smov 0  }
   0x7   :  { %s830_s16 = smov 0   ;;  %s832_s17 = smov 0  }
   0x8 LB: > { %s479_s18 = sadd.s32 4294967295, %s792_s17   ;;  %s480_s19 = sadd.s32 4294967294, %s792_s17   ;;  %s792_s17 = sphi %s832_s17, %s22_s17   ;;  %s788_s16 = sphi %s830_s16, %s1094_s16   ;;  %s784_s15 = sphi %s828_s15, %s1093_s15   ;;  %s780_s14 = sphi %s826_s14, %s1092_s14   ;;  %s776_s13 = sphi %s824_s13, %s1091_s13   ;;  %s772_s12 = sphi %s822_s12, %s1090_s12  }
   0x9   : > { %s34_s20 = sadd.s32 1, %s788_s16  ;;  %s43_s21 = sadd.s32 1, %s780_s14 }
   0xa   : > { %p36_p0 = scmp.ge.s32.totalorder %s34_s20, 4  ;;  %p50_p1 = scmp.ne.s32.totalorder %s780_s14, %s776_s13 }
   0xb   : > { %p51_p2 = scmp.eq.s32.totalorder %s792_s17, 0  ;;  %p56_p3 = scmp.ne.s32.totalorder %s776_s13, %s772_s12 }
   0xc   : > { %s1096_s20 = smov (%p36_p0, %s34_s20), 0  ;;  %p57_p5 = scmp.eq.s32.totalorder %s479_s18, 0 }
   0xd   : > { %p863_p4 = por %p51_p2, %p50_p1  ;;  %s38_s23 = ssub.s32 %s788_s16, %s1096_s20 }
   0xe   : > { %p134_p6 = scmp.eq.s32.totalorder %s479_s18, 3  ;;  %p41_p7 = scmp.eq.s32.totalorder %s38_s23, 0 }
   0xf   : > { %p869_p8 = por %p57_p5, %p56_p3  ;;  %p140_p10 = scmp.eq.s32.totalorder %s480_s19, 3 }
  0x10   : > { %p873_p9 = por %p134_p6, %p50_p1  ;;  %p591_p12 = scmp.lt.s32.totalorder %s792_s17, 4 }
  0x11   : > { %s1080_s24 = scalar_select %p869_p8, 1, 0 }
  0x12   : > { %s1081_s25 = scalar_select %p873_p9, 1, 0 }
  0x13   : > { %s878_s26 = scalar_select %p41_p7, %s780_s14, %s43_s21  }
  0x14   : > { %p880_p11 = por %p140_p10, %p56_p3  ;;  %s886_s28 = sand.u32 1, %s780_s14  }
  0x15   : > { %s483_s29 = sshll.u32 %s886_s28, 3  ;;  %s484_s30 = sshll.u32 %s788_s16, 7 }
  0x16   : > { %s1082_s27 = scalar_select %p880_p11, 1, 0 }
  0x17   : > { %s893_s6 = scalar_lea.hbm %s1073_s0, %s484_s30  ;;  %s164_s7 = scalar_lea.vmem [#allocation2], %s483_s29 }
  0x18   : > { %s172_s8 = sshll.u32 %s164_s7, 4  ;;  %p899_p13 = pnand %p591_p12, %p863_p4  ;;  %s895_s8 = int_to_ptr.vmem [resolvable:$true] %s172_s8 }
  0x19   : > { %s161_s10 = scalar_lea.sflag [#allocation3], %s886_s28  ;;  %s646_s11 = scalar_lea.hbm %s893_s6, 128 }
  0x1a   : > { %p647_p2 = scmp.ne.s32.totalorder %s893_s6, %s646_s11  ;;  %p648_p3 = pneg %p899_p13 }
  0x1b   : > { %s651_s21 = scalar_lea.hbm %s1073_s0, 512  ;;  %p652_p4 = scmp.lt.u32.totalorder %s893_s6, %s1073_s0 }
  0x1c   : > { %p649_p5 = pnand %p648_p3, %p647_p2  ;;  %p653_p7 = scmp.lt.u32.totalorder %s651_s21, %s646_s11 }
  0x1d   : > { %p655_p12 = scmp.lt.u32.totalorder %s646_s11, %s893_s6 }
  0x1e   : > { %p650_p6 = pneg %p649_p5  ;;  %p654_p10 = por %p653_p7, %p652_p4 }
  0x20   : > { %p656_p0 = por %p655_p12, %p654_p10 }
  0x22   : > { %p657_p1 = pnand %p656_p0, %p650_p6 }
  0x24   : > { %660 = shalt.err (!%p657_p1)
}
  0x25   : > { %s661_s29 = scalar_lea.vmem %s895_s8, 128  ;;  %s794_s30 = smov [#allocation2]  }
  0x26   : > { %p662_p2 = scmp.ne.s32.totalorder %s895_s8, %s661_s29  ;;  %s666_s4 = sshll.u32 %s794_s30, 4  ;;  %s667_s4 = int_to_ptr.vmem [resolvable:$false] %s666_s4 }
  0x27   : > { %s668_s5 = scalar_lea.vmem %s667_s4, 256  ;;  %p669_p9 = scmp.lt.s32.totalorder %s895_s8, %s667_s4 }
  0x28   : > { %p664_p5 = pnand %p662_p2, %p648_p3  ;;  %p670_p4 = scmp.lt.s32.totalorder %s668_s5, %s661_s29 }
  0x2a   : > { %p665_p11 = pneg %p664_p5  ;;  %p671_p7 = por %p670_p4, %p669_p9 }
  0x2c   : > { %p672_p10 = pnand %p671_p7, %p665_p11 }
  0x2e   : > { %675 = shalt.err (!%p672_p10)
}
  0x2f   : > { %583 = dma.hbm_to_vmem [thread:$0]  (!%p899_p13), %s893_s6, 128, %s895_s8, %s161_s10  }
  0x30   : > { %p1084_p0 = scmp.lt.s32.totalorder %s792_s17, 5  ;;  %p1085_p1 = scmp.ge.s32.totalorder %s792_s17, 1 }
  0x31   : > { %s485_s11 = sshll.u32 %s886_s28, 7  ;;  %s497_s18 = sshll.u32 %s788_s16, 11 }
  0x32   : > { %p935_p6 = pnand %p1085_p1, %p1084_p0  ;;  %s944_s22 = scalar_lea.hbm %s1074_s1, %s497_s18 }
  0x33   : > { %s183_s23 = scalar_lea.vmem [#allocation5], %s485_s11  ;;  %s180_s6 = scalar_lea.sflag [#allocation6], %s886_s28 }
  0x34   : > { %s190_s29 = sshll.u32 %s183_s23, 4  ;;  %s676_s8 = scalar_lea.hbm %s944_s22, 2048  ;;  %s946_s29 = int_to_ptr.vmem [resolvable:$true] %s190_s29 }
  0x35   : > { %p677_p9 = scmp.ne.s32.totalorder %s944_s22, %s676_s8  ;;  %s681_s4 = scalar_lea.hbm %s1074_s1, 8192 }
  0x36   : > { %p682_p2 = scmp.lt.u32.totalorder %s944_s22, %s1074_s1  ;;  %p683_p5 = scmp.lt.u32.totalorder %s681_s4, %s676_s8 }
  0x37   : > { %p679_p11 = pnand %p677_p9, %p648_p3  ;;  %p685_p7 = scmp.lt.u32.totalorder %s676_s8, %s944_s22 }
  0x38   : > { %p684_p4 = por %p683_p5, %p682_p2 }
  0x39   : > { %p680_p12 = pneg %p679_p11 }
  0x3a   : > { %p686_p10 = por %p685_p7, %p684_p4 }
  0x3c   : > { %p687_p0 = pnand %p686_p10, %p680_p12 }
  0x3e   : > { %690 = shalt.err (!%p687_p0)
}
  0x3f   : > { %s691_s11 = scalar_lea.vmem %s946_s29, 2048  ;;  %s795_s19 = smov [#allocation5]  }
  0x40   : > { %p692_p1 = scmp.ne.s32.totalorder %s946_s29, %s691_s11  ;;  %s696_s21 = sshll.u32 %s795_s19, 4  ;;  %s697_s21 = int_to_ptr.vmem [resolvable:$false] %s696_s21 }
  0x41   : > { %s698_s23 = scalar_lea.vmem %s697_s21, 4096  ;;  %p699_p8 = scmp.lt.s32.totalorder %s946_s29, %s697_s21 }
  0x42   : > { %p694_p9 = pnand %p692_p1, %p648_p3  ;;  %p700_p2 = scmp.lt.s32.totalorder %s698_s23, %s691_s11 }
  0x44   : > { %p695_p11 = pneg %p694_p9  ;;  %p701_p5 = por %p700_p2, %p699_p8 }
  0x46   : > { %p702_p4 = pnand %p701_p5, %p695_p11 }
  0x48   : > { %705 = shalt.err (!%p702_p4)
}
  0x49   : > { %s796_s8 = smov 128   ;;  %s797_s10 = smov 8  }
  0x4a   : > { %586 = dma.hbm_to_vmem [thread:$0]  (!%p899_p13), %s944_s22, 2048, %s946_s29, %s180_s6, %s796_s8, %s796_s8, %s797_s10  }
  0x4b   : > { %208 = sbr.rel (%p935_p6) target bundleno = 348 (0x15c), region = 32  ;;  %s977_s30 = sand.u32 (!%p935_p6), 1, %s776_s13  }
  0x4c   : > { %s489_s4 = sshll.u32 (!%p935_p6), %s977_s30, 3  ;;  %s211_s5 = scalar_lea.sflag (!%p935_p6), [#allocation3], %s977_s30 }
  0x4d   : > { %s983_s18 = scalar_lea.vmem (!%p935_p6), [#allocation2], %s489_s4  ;;  %p1087_p8 = scmp.ne.s32.totalorder (!%p935_p6), %s1080_s24, 0 }
  0x52   : > { %759 = dma.done.wait (%p1087_p8), %s211_s5, 128  }
  0x53   : > { %761 = vsyncadd (%p1087_p8), %s211_s5, 4294967168  ;;  %s490_s28 = sshll.u32 %s977_s30, 7  ;;  %s220_s9 = scalar_lea.sflag [#allocation6], %s977_s30 }
  0x54   : > { %s991_s7 = scalar_lea.vmem [#allocation5], %s490_s28 }
  0x55   : > { %763 = dma.done.wait (%p1087_p8), %s220_s9, 2048  }
  0x56   : > { %765 = vsyncadd (%p1087_p8), %s220_s9, 4294965248  ;;  %v798_v0 = vmov 0.0|0.0   ;;  %vm799_vm0 = vmmov 0   ;;  %v800_v1 = vmov 0.0   ;;  %v258_v2 = vld [vmem:[%s991_s7] sm:$0xff]  ;;  %v259_v3 = vld [vmem:[%s991_s7 + $0x8] sm:$0xff] }
  0x57   : > { %550 = vmatprep.subr.bf16.mxu0 %v798_v0  ;;  %547 = vmatprep.mubr.msk.f32.mxu0 %vm799_vm0, %v800_v1  ;;  %v260_v4 = vld [vmem:[%s991_s7 + $0x10] sm:$0xff]  ;;  %v551_v5 = vpack.c.bf16 %v259_v3, %v258_v2  ;;  %v261_v6 = vld [vmem:[%s991_s7 + $0x18] sm:$0xff]  ;;  %v262_v8 = vld [vmem:[%s991_s7 + $0x20] sm:$0xff]  ;;  %p254_p13 = scmp.lt.s32.totalorder %s784_s15, 3  ;;  %s494_s11 = sshll.u32 %s784_s15, 7 }
  0x58   : > { %v554_v7 = vpack.c.bf16 %v261_v6, %v260_v4  ;;  %v263_v9 = vld [vmem:[%s991_s7 + $0x28] sm:$0xff]  ;;  %v264_v11 = vld [vmem:[%s991_s7 + $0x30] sm:$0xff]  ;;  %v265_v12 = vld [vmem:[%s991_s7 + $0x38] sm:$0xff]  ;;  %s253_s19 = scalar_lea.vmem [#allocation7], %s489_s4  ;;  %s1025_s10 = scalar_lea.hbm %s1076_s3, %s494_s11 }
  0x59   : > { %552 = vmatpush3.bf16.msra.mxu0 %v551_v5  ;;  %v557_v10 = vpack.c.bf16 %v263_v9, %v262_v8  ;;  %v560_v13 = vpack.c.bf16 %v265_v12, %v264_v11  ;;  %v266_v14 = vld [vmem:[%s991_s7 + $0x40] sm:$0xff]  ;;  %v267_v15 = vld [vmem:[%s991_s7 + $0x48] sm:$0xff]  ;;  %v268_v17 = vld [vmem:[%s991_s7 + $0x50] sm:$0xff]  ;;  %s255_s24 = scalar_select %p254_p13, %s784_s15, 3 }
  0x5a   : > { %553 = vmatprep.subr.bf16.mxu0 %v798_v0  ;;  %v563_v16 = vpack.c.bf16 %v267_v15, %v266_v14  ;;  %v269_v18 = vld [vmem:[%s991_s7 + $0x58] sm:$0xff]  ;;  %v270_v20 = vld [vmem:[%s991_s7 + $0x60] sm:$0xff]  ;;  %v271_v21 = vld [vmem:[%s991_s7 + $0x68] sm:$0xff]  ;;  %s367_s21 = sshll.u32 %s253_s19, 4  ;;  %s353_s5 = scalar_lea.sflag [#allocation4], %s977_s30  ;;  %s1027_s21 = int_to_ptr.vmem [resolvable:$true] %s367_s21 }
  0x5b   : > { %v566_v19 = vpack.c.bf16 %v269_v18, %v268_v17  ;;  %v569_v22 = vpack.c.bf16 %v271_v21, %v270_v20  ;;  %v272_v23 = vld [vmem:[%s991_s7 + $0x70] sm:$0xff]  ;;  %v273_v24 = vld [vmem:[%s991_s7 + $0x78] sm:$0xff]  ;;  %s256_s6 = scalar_lea.vmem %s1075_s2, %s255_s24  ;;  %p1088_p6 = scmp.ne.s32.totalorder %s1081_s25, 0 }
  0x5c   : > { %v572_v25 = vpack.c.bf16 %v273_v24, %v272_v23  ;;  %v257_v26 = vld [vmem:[%s983_s18] sm:$0xff]  ;;  %s706_s18 = scalar_lea.vmem %s1027_s21, 128  ;;  %s801_s15 = smov [#allocation7]  }
  0x5d   : > { %555 = vmatpush3.bf16.msra.mxu0 %v554_v7  ;;  %v492_v27 = vld [vmem:[%s256_s6] ss:$0 sm:$0xff]  ;;  %p707_p3 = scmp.ne.s32.totalorder %s1027_s21, %s706_s18  ;;  %s710_s4 = sshll.u32 %s801_s15, 4  ;;  %s711_s4 = int_to_ptr.vmem [resolvable:$false] %s710_s4 }
  0x5e   : > { %556 = vmatprep.subr.bf16.mxu0 %v798_v0  ;;  %s712_s28 = scalar_lea.vmem %s711_s4, 256  ;;  %p713_p10 = scmp.lt.s32.totalorder %s1027_s21, %s711_s4 }
  0x5f   : > { %p708_p12 = pnand %p707_p3, %p1088_p6  ;;  %p714_p0 = scmp.lt.s32.totalorder %s712_s28, %s706_s18 }
  0x61   : > { %558 = vmatpush3.bf16.msra.mxu0 %v557_v10  ;;  %p709_p7 = pneg %p708_p12  ;;  %p715_p1 = por %p714_p0, %p713_p10 }
  0x62   : > { %559 = vmatprep.subr.bf16.mxu0 %v798_v0 }
  0x63   : > { %p716_p9 = pnand %p715_p1, %p709_p7 }
  0x65   : > { %561 = vmatpush3.bf16.msra.mxu0 %v560_v13 }
  0x66   : > { %562 = vmatprep.subr.bf16.mxu0 %v798_v0 }
  0x69   : > { %564 = vmatpush3.bf16.msra.mxu0 %v563_v16 }
  0x6a   : > { %565 = vmatprep.subr.bf16.mxu0 %v798_v0 }
  0x6d   : > { %567 = vmatpush3.bf16.msra.mxu0 %v566_v19 }
  0x6e   : > { %568 = vmatprep.subr.bf16.mxu0 %v798_v0 }
  0x71   : > { %570 = vmatpush3.bf16.msra.mxu0 %v569_v22 }
  0x72   : > { %571 = vmatprep.subr.bf16.mxu0 %v798_v0 }
  0x75   : > { %573 = vmatpush3.bf16.msra.mxu0 %v572_v25 }
  0x78   : > { %548 = vmatmul.mubr.f32.vlgmr.msra.gmra.mrb[0].mxu0 %v257_v26 }
 0x14b   : > { %v347_v28 = vpop.f32.mrb[0].mxu0 }
 0x14c   : > { %v348_v29 = vadd.f32 %v492_v27, %v347_v28  ;;  %v549_v30 = vpop.f32.mrb[1].mxu0 }
 0x14e   : > { %351 = vst [vmem:[%s253_s19] sm:$0xff] %v348_v29 }
 0x14f   : > { %719 = shalt.err (!%p716_p9)
}
 0x150   : > { %s720_s30 = scalar_lea.hbm %s1025_s10, 128  ;;  %s724_s24 = scalar_lea.hbm %s1076_s3, 512 }
 0x151   : > { %p721_p11 = scmp.ne.s32.totalorder %s1025_s10, %s720_s30  ;;  %p725_p4 = scmp.lt.u32.totalorder %s1025_s10, %s1076_s3 }
 0x152   : > { %p726_p8 = scmp.lt.u32.totalorder %s724_s24, %s720_s30  ;;  %p728_p3 = scmp.lt.u32.totalorder %s720_s30, %s1025_s10 }
 0x153   : > { %p722_p2 = pnand %p721_p11, %p1088_p6 }
 0x154   : > { %p727_p13 = por %p726_p8, %p725_p4 }
 0x155   : > { %p723_p5 = pneg %p722_p2 }
 0x156   : > { %p729_p12 = por %p728_p3, %p727_p13 }
 0x158   : > { %p730_p7 = pnand %p729_p12, %p723_p5 }
 0x15a   : > { %733 = shalt.err (!%p730_p7)
}
 0x15b   : > { %578 = dma.vmem_to_hbm [thread:$0]  (%p1088_p6), %s1027_s21, 128, %s1025_s10, %s353_s5  }
 0x15c PF: > { %p592_p10 = scmp.ge.s32.totalorder %s792_s17, 2  ;;  %s379_s6 = sand.u32 1, %s772_s12  }
 0x15d   : > { %p1089_p0 = scmp.ne.s32.totalorder %s1082_s27, 0  ;;  %s380_s11 = scalar_lea.sflag [#allocation4], %s379_s6 }
 0x15f   : > { %p588_p1 = pnand %p592_p10, %p1089_p0 }
 0x161   : > { %767 = dma.done.wait (!%p588_p1), %s380_s11, 128  }
 0x162   : > { %769 = vsyncadd (!%p588_p1), %s380_s11, 4294967168  ;;  %s22_s17 = sadd.s32 1, %s792_s17   ;;  %s1090_s12 = smov %s776_s13 }
 0x163   : > { %p19_p9 = scmp.ge.s32.totalorder %s22_s17, 6   ;;  %s1091_s13 = smov %s780_s14 }
 0x164   : > { %s1092_s14 = smov %s878_s26  ;;  %s1093_s15 = smov %s788_s16 }
 0x165   : > { %s1094_s16 = smov %s1096_s20  ;;  %21 = sbr.rel (!%p19_p9) target bundleno = 8 (0x8), region = 93 }
 0x16c   :  { %385 = vsyncpa [#allocation3], 1 }
 0x16d   :  { %387 = vsyncpa [#allocation3 + $0x1], 1 }
 0x16e   :  { %388 = vsyncpa [#allocation6], 1 }
 0x16f   :  { %390 = vsyncpa [#allocation6 + $0x1], 1 }
 0x170   :  { %391 = vsyncpa [#allocation4], 1 }
 0x171   :  { %393 = vsyncpa [#allocation4 + $0x1], 1 }

</bundles_post_ra>
